<compile_context>
chip_gen: v6e
topology: v6e:2x2x1
jax: 0.10.0
libtpu: 0.0.40
codegen_flags: <defaults>
</compile_context>

<pallas_src>
import jax
import jax.numpy as jnp
from jax.experimental import pallas as pl
from jax.experimental.pallas import tpu as pltpu


def _round_up(x, m):
    return ((x + m - 1) // m) * m


def linearnet_kernel(x_ref, w1_ref, b1_ref, w2_ref, b2_ref, w3_ref, b3_ref, o_ref):
    # Layer 1: Linear + ReLU  (bf16 operands, f32 MXU accumulate, f32 epilogue)
    h1 = jnp.dot(x_ref[...], w1_ref[...], preferred_element_type=jnp.float32)
    h1 = jnp.maximum(h1 + b1_ref[...], 0.0).astype(jnp.bfloat16)

    # Layer 2: Linear + ReLU
    h2 = jnp.dot(h1, w2_ref[...], preferred_element_type=jnp.float32)
    h2 = jnp.maximum(h2 + b2_ref[...], 0.0).astype(jnp.bfloat16)

    # Layer 3: Linear (no activation), lane-dense f32 store
    out = jnp.dot(h2, w3_ref[...], preferred_element_type=jnp.float32)
    o_ref[...] = (out + b3_ref[...]).astype(o_ref.dtype)


def linearnet_forward(x, padded_params, num_classes, *, block_m=1024):
    """x: (B, input_size) f32. padded_params: lane-padded bf16 weights / f32 biases.

    Returns (B, num_classes) f32.
    """
    B, F = x.shape
    F_pad, H_pad = padded_params["w1"].shape
    C_pad = padded_params["w3"].shape[1]

    # Batch tile: at least 8 sublanes, at most block_m rows.
    bm = min(block_m, _round_up(B, 8))
    B_pad = _round_up(B, bm)

    # Pad batch + feature dims with zeros and cast activations to bf16.
    xp = jnp.pad(x.astype(jnp.bfloat16), ((0, B_pad - B), (0, F_pad - F)))

    grid = (B_pad // bm,)

    in_specs = [
        pl.BlockSpec((bm, F_pad), lambda i: (i, 0)),       # x tile, streamed
        pl.BlockSpec((F_pad, H_pad), lambda i: (0, 0)),    # w1, VMEM-resident
        pl.BlockSpec((1, H_pad), lambda i: (0, 0)),        # b1
        pl.BlockSpec((H_pad, H_pad), lambda i: (0, 0)),    # w2
        pl.BlockSpec((1, H_pad), lambda i: (0, 0)),        # b2
        pl.BlockSpec((H_pad, C_pad), lambda i: (0, 0)),    # w3
        pl.BlockSpec((1, C_pad), lambda i: (0, 0)),        # b3
    ]
    out_specs = pl.BlockSpec((bm, C_pad), lambda i: (i, 0))

    out = pl.pallas_call(
        linearnet_kernel,
        out_shape=jax.ShapeDtypeStruct((B_pad, C_pad), jnp.float32),
        grid=grid,
        in_specs=in_specs,
        out_specs=out_specs,
        compiler_params=pltpu.CompilerParams(
            dimension_semantics=("parallel",),
        ),
    )(
        xp,
        padded_params["w1"], padded_params["b1"],
        padded_params["w2"], padded_params["b2"],
        padded_params["w3"], padded_params["b3"],
    )
    return out[:B, :num_classes]


def init_params(key, input_size, num_classes):
    """Logical f32 params mimicking torch.nn.Linear defaults (U[-1/sqrt(in), 1/sqrt(in)]).

    Weights stored pre-transposed as (in, out) so the kernel computes x @ W + b,
    which matches torch's y = x @ W.T + b.
    """
    dims = [(input_size, 75), (75, 50), (50, num_classes)]
    params = {}
    for idx, (fan_in, fan_out) in enumerate(dims, start=1):
        key, kw, kb = jax.random.split(key, 3)
        bound = 1.0 / jnp.sqrt(jnp.float32(fan_in))
        params[f"w{idx}"] = jax.random.uniform(
            kw, (fan_in, fan_out), jnp.float32, minval=-bound, maxval=bound
        )
        params[f"b{idx}"] = jax.random.uniform(
            kb, (1, fan_out), jnp.float32, minval=-bound, maxval=bound
        )
    return params


def prepare_params(params, lane=128):
    """Zero-pad every dim to a lane multiple; weights -> bf16, biases stay f32."""
    def pad_to(a, rows, cols, dtype):
        out = jnp.zeros((rows, cols), dtype)
        return out.at[: a.shape[0], : a.shape[1]].set(a.astype(dtype))

    f_in, h1 = params["w1"].shape
    h2 = params["w2"].shape[1]
    c = params["w3"].shape[1]
    F_pad = _round_up(f_in, lane)
    H1_pad = _round_up(h1, lane)
    H2_pad = _round_up(h2, lane)
    C_pad = _round_up(c, lane)

    return {
        "w1": pad_to(params["w1"], F_pad, H1_pad, jnp.bfloat16),
        "b1": pad_to(params["b1"], 1, H1_pad, jnp.float32),
        "w2": pad_to(params["w2"], H1_pad, H2_pad, jnp.bfloat16),
        "b2": pad_to(params["b2"], 1, H2_pad, jnp.float32),
        "w3": pad_to(params["w3"], H2_pad, C_pad, jnp.bfloat16),
        "b3": pad_to(params["b3"], 1, C_pad, jnp.float32),
    }


def reference_forward_f32(x, params):
    """Pure-f32 JAX reference of the logical forward pass (module semantics)."""
    h = jnp.maximum(x @ params["w1"] + params["b1"], 0.0)
    h = jnp.maximum(h @ params["w2"] + params["b2"], 0.0)
    return h @ params["w3"] + params["b3"]


def reference_forward_bf16(x, params):
    """JAX reference emulating the kernel's mixed-precision path exactly."""
    xb = x.astype(jnp.bfloat16)
    h = jnp.dot(xb, params["w1"].astype(jnp.bfloat16),
                preferred_element_type=jnp.float32) + params["b1"]
    h = jnp.maximum(h, 0.0).astype(jnp.bfloat16)
    h = jnp.dot(h, params["w2"].astype(jnp.bfloat16),
                preferred_element_type=jnp.float32) + params["b2"]
    h = jnp.maximum(h, 0.0).astype(jnp.bfloat16)
    return jnp.dot(h, params["w3"].astype(jnp.bfloat16),
                   preferred_element_type=jnp.float32) + params["b3"]


if __name__ == "__main__":
    # Module defaults: only_image=False -> input_size = 2 * 14 * 14 = 392, num_classes = 2.
    ONLY_IMAGE = False
    BASE_INPUT = 14 * 14
    INPUT_SIZE = BASE_INPUT if ONLY_IMAGE else 2 * BASE_INPUT
    NUM_CLASSES = 10 if ONLY_IMAGE else 2
    BATCH = 2

    key = jax.random.PRNGKey(0)
    key, kx = jax.random.split(key)
    x = jax.random.normal(kx, (BATCH, INPUT_SIZE), jnp.float32)

    params = init_params(key, INPUT_SIZE, NUM_CLASSES)
    padded = prepare_params(params)

    out = linearnet_forward(x, padded, NUM_CLASSES)
    out = jax.block_until_ready(out)

    assert out.shape == (BATCH, NUM_CLASSES), out.shape

    # Tight check against a reference that follows the same bf16/f32 math path.
    ref_mixed = reference_forward_bf16(x, params)
    assert jnp.allclose(out, ref_mixed, atol=1e-2, rtol=1e-2), "mismatch vs bf16 reference"

    # Loose sanity check against the pure-f32 module semantics.
    ref_f32 = reference_forward_f32(x, params)
    assert jnp.allclose(out, ref_f32, atol=5e-2, rtol=5e-2), "mismatch vs f32 reference"

    print("KERNEL_OK")
</pallas_src>

<mosaic_0001>
module attributes {stable_mosaic.version = 11 : i64} {
  func.func @linearnet_kernel(%arg0: i32, %arg1: memref<8x512xbf16, #tpu.memory_space<vmem>>, %arg2: memref<512x128xbf16, #tpu.memory_space<vmem>>, %arg3: memref<1x128xf32, #tpu.memory_space<vmem>>, %arg4: memref<128x128xbf16, #tpu.memory_space<vmem>>, %arg5: memref<1x128xf32, #tpu.memory_space<vmem>>, %arg6: memref<128x128xbf16, #tpu.memory_space<vmem>>, %arg7: memref<1x128xf32, #tpu.memory_space<vmem>>, %arg8: memref<8x128xf32, #tpu.memory_space<vmem>>) attributes {dimension_semantics = [#tpu.dimension_semantics<parallel>], iteration_bounds = array<i64: 1>, scalar_prefetch = 0 : i64, scratch_operands = 0 : i64, tpu.core_type = #tpu.core_type<tc>, window_params = [{transform_indices = @transform_0, window_bounds = array<i64: 8, 512>}, {pipeline_mode = #tpu.pipeline_mode<synchronous>, transform_indices = @transform_1, window_bounds = array<i64: 512, 128>}, {pipeline_mode = #tpu.pipeline_mode<synchronous>, transform_indices = @transform_2, window_bounds = array<i64: 1, 128>}, {pipeline_mode = #tpu.pipeline_mode<synchronous>, transform_indices = @transform_3, window_bounds = array<i64: 128, 128>}, {pipeline_mode = #tpu.pipeline_mode<synchronous>, transform_indices = @transform_4, window_bounds = array<i64: 1, 128>}, {pipeline_mode = #tpu.pipeline_mode<synchronous>, transform_indices = @transform_5, window_bounds = array<i64: 128, 128>}, {pipeline_mode = #tpu.pipeline_mode<synchronous>, transform_indices = @transform_6, window_bounds = array<i64: 1, 128>}, {transform_indices = @transform_7, window_bounds = array<i64: 8, 128>}]} {
    %c0 = arith.constant 0 : index
    %c0_0 = arith.constant 0 : index
    %0 = vector.load %arg1[%c0, %c0_0] : memref<8x512xbf16, #tpu.memory_space<vmem>>, vector<8x512xbf16>
    %c0_1 = arith.constant 0 : index
    %c0_2 = arith.constant 0 : index
    %1 = vector.load %arg2[%c0_1, %c0_2] : memref<512x128xbf16, #tpu.memory_space<vmem>>, vector<512x128xbf16>
    %cst = arith.constant dense<0.000000e+00> : vector<8x128xf32>
    %2 = tpu.matmul %0, %1, %cst {dimension_numbers = #tpu.dot_dimension_numbers<[1], [0], [0], [1], [0, 0, 1, 1], [], []>} : vector<8x512xbf16>, vector<512x128xbf16>, vector<8x128xf32> -> vector<8x128xf32>
    %c0_3 = arith.constant 0 : index
    %c0_4 = arith.constant 0 : index
    %3 = vector.load %arg3[%c0_3, %c0_4] : memref<1x128xf32, #tpu.memory_space<vmem>>, vector<1x128xf32>
    %4 = vector.broadcast %3 : vector<1x128xf32> to vector<8x128xf32>
    %5 = arith.addf %2, %4 : vector<8x128xf32>
    %cst_5 = arith.constant 0.000000e+00 : f32
    %6 = vector.broadcast %cst_5 : f32 to vector<8x128xf32>
    %7 = arith.maximumf %5, %6 : vector<8x128xf32>
    %8 = arith.truncf %7 : vector<8x128xf32> to vector<8x128xbf16>
    %c0_6 = arith.constant 0 : index
    %c0_7 = arith.constant 0 : index
    %9 = vector.load %arg4[%c0_6, %c0_7] : memref<128x128xbf16, #tpu.memory_space<vmem>>, vector<128x128xbf16>
    %cst_8 = arith.constant dense<0.000000e+00> : vector<8x128xf32>
    %10 = tpu.matmul %8, %9, %cst_8 {dimension_numbers = #tpu.dot_dimension_numbers<[1], [0], [0], [1], [0, 0, 1, 1], [], []>} : vector<8x128xbf16>, vector<128x128xbf16>, vector<8x128xf32> -> vector<8x128xf32>
    %c0_9 = arith.constant 0 : index
    %c0_10 = arith.constant 0 : index
    %11 = vector.load %arg5[%c0_9, %c0_10] : memref<1x128xf32, #tpu.memory_space<vmem>>, vector<1x128xf32>
    %12 = vector.broadcast %11 : vector<1x128xf32> to vector<8x128xf32>
    %13 = arith.addf %10, %12 : vector<8x128xf32>
    %cst_11 = arith.constant 0.000000e+00 : f32
    %14 = vector.broadcast %cst_11 : f32 to vector<8x128xf32>
    %15 = arith.maximumf %13, %14 : vector<8x128xf32>
    %16 = arith.truncf %15 : vector<8x128xf32> to vector<8x128xbf16>
    %c0_12 = arith.constant 0 : index
    %c0_13 = arith.constant 0 : index
    %17 = vector.load %arg6[%c0_12, %c0_13] : memref<128x128xbf16, #tpu.memory_space<vmem>>, vector<128x128xbf16>
    %cst_14 = arith.constant dense<0.000000e+00> : vector<8x128xf32>
    %18 = tpu.matmul %16, %17, %cst_14 {dimension_numbers = #tpu.dot_dimension_numbers<[1], [0], [0], [1], [0, 0, 1, 1], [], []>} : vector<8x128xbf16>, vector<128x128xbf16>, vector<8x128xf32> -> vector<8x128xf32>
    %c0_15 = arith.constant 0 : index
    %c0_16 = arith.constant 0 : index
    %19 = vector.load %arg7[%c0_15, %c0_16] : memref<1x128xf32, #tpu.memory_space<vmem>>, vector<1x128xf32>
    %20 = vector.broadcast %19 : vector<1x128xf32> to vector<8x128xf32>
    %21 = arith.addf %18, %20 : vector<8x128xf32>
    %c0_17 = arith.constant 0 : index
    %c0_18 = arith.constant 0 : index
    %22 = vector.load %arg8[%c0_17, %c0_18] : memref<8x128xf32, #tpu.memory_space<vmem>>, vector<8x128xf32>
    tpu.vector_store %arg8[%c0_17, %c0_18], %21 {strides = array<i32>} : memref<8x128xf32, #tpu.memory_space<vmem>>, vector<8x128xf32>,
    return
  }
  func.func @transform_0(%arg0: i32) -> (i32, i32) {
    %c0_i32 = arith.constant 0 : i32
    %c0_i32_0 = arith.constant 0 : i32
    return %arg0, %c0_i32 : i32, i32
  }
  func.func @transform_1(%arg0: i32) -> (i32, i32) {
    %c0_i32 = arith.constant 0 : i32
    %c0_i32_0 = arith.constant 0 : i32
    %c0_i32_1 = arith.constant 0 : i32
    return %c0_i32, %c0_i32_0 : i32, i32
  }
  func.func @transform_2(%arg0: i32) -> (i32, i32) {
    %c0_i32 = arith.constant 0 : i32
    %c0_i32_0 = arith.constant 0 : i32
    %c0_i32_1 = arith.constant 0 : i32
    return %c0_i32, %c0_i32_0 : i32, i32
  }
  func.func @transform_3(%arg0: i32) -> (i32, i32) {
    %c0_i32 = arith.constant 0 : i32
    %c0_i32_0 = arith.constant 0 : i32
    %c0_i32_1 = arith.constant 0 : i32
    return %c0_i32, %c0_i32_0 : i32, i32
  }
  func.func @transform_4(%arg0: i32) -> (i32, i32) {
    %c0_i32 = arith.constant 0 : i32
    %c0_i32_0 = arith.constant 0 : i32
    %c0_i32_1 = arith.constant 0 : i32
    return %c0_i32, %c0_i32_0 : i32, i32
  }
  func.func @transform_5(%arg0: i32) -> (i32, i32) {
    %c0_i32 = arith.constant 0 : i32
    %c0_i32_0 = arith.constant 0 : i32
    %c0_i32_1 = arith.constant 0 : i32
    return %c0_i32, %c0_i32_0 : i32, i32
  }
  func.func @transform_6(%arg0: i32) -> (i32, i32) {
    %c0_i32 = arith.constant 0 : i32
    %c0_i32_0 = arith.constant 0 : i32
    %c0_i32_1 = arith.constant 0 : i32
    return %c0_i32, %c0_i32_0 : i32, i32
  }
  func.func @transform_7(%arg0: i32) -> (i32, i32) {
    %c0_i32 = arith.constant 0 : i32
    %c0_i32_0 = arith.constant 0 : i32
    return %arg0, %c0_i32 : i32, i32
  }
}

</mosaic_0001>

<bundles_post_ra>
// kernel: tpu_custom_call.1
= control target key start
LH: loop header
LB: loop body
LE: loop exit
PB: predicated region body
PF: predicated region fallthrough
CT: control target
= control target key end

     0   :  { %12 = vsyncpa [#allocation3], 0  ;;  %s1110_s0 = inlined_call_operand.hbm [shape: bf16[8,512], index: 0, kind: input, shape index: {}]   ;;  %s1111_s1 = inlined_call_operand.hbm [shape: bf16[512,128], index: 1, kind: input, shape index: {}]   ;;  %s1112_s2 = inlined_call_operand.vmem [shape: f32[1,128], index: 2, kind: input, shape index: {}]   ;;  %s1113_s3 = inlined_call_operand.hbm [shape: bf16[128,128], index: 3, kind: input, shape index: {}]   ;;  %s1114_s4 = inlined_call_operand.vmem [shape: f32[1,128], index: 4, kind: input, shape index: {}]   ;;  %s1115_s5 = inlined_call_operand.hbm [shape: bf16[128,128], index: 5, kind: input, shape index: {}]   ;;  %s1116_s6 = inlined_call_operand.vmem [shape: f32[1,128], index: 6, kind: input, shape index: {}]   ;;  %s1117_s7 = inlined_call_operand.hbm [shape: f32[8,128], index: 7, kind: output, shape index: {}]  }
   0x1   :  { %13 = vsyncpa [#allocation6], 0 }
   0x2   :  { %14 = vsyncpa [#allocation9], 0 }
   0x3   :  { %15 = vsyncpa [#allocation4], 0  ;;  %s1010_s24 = smov [#allocation5]  }
   0x4   :  { %s31_s25 = sshll.u32 %s1010_s24, 4  ;;  %s32_s25 = int_to_ptr.vmem [resolvable:$true] %s31_s25 }
   0x5   :  { %s910_s26 = scalar_lea.vmem %s32_s25, 4096  ;;  %p915_p1 = scmp.lt.s32.totalorder %s32_s25, %s32_s25 }
   0x6   :  { %p911_p0 = scmp.ne.s32.totalorder %s32_s25, %s910_s26  ;;  %p916_p2 = scmp.lt.s32.totalorder %s910_s26, %s910_s26 }
   0x8   :  { %p917_p3 = por %p916_p2, %p915_p1 }
   0xa   :  { %p918_p4 = pnand %p917_p3, %p911_p0 }
   0xc   :  { %921 = shalt.err (!%p918_p4)
}
   0xd   :  { %s1011_s27 = smov 64   ;;  %s1012_s28 = smov 4  }
   0xe   :  { %37 = dma.hbm_to_vmem [thread:$0]  %s1111_s1, 4096, %s32_s25, [#allocation6], %s1011_s27, %s1011_s27, %s1012_s28  }
   0xf   :  { %s1013_s8 = smov [#allocation2]   ;;  %s1014_s10 = smov [#allocation7]  }
  0x10   :  { %s22_s9 = sshll.u32 %s1013_s8, 4  ;;  %s45_s11 = sshll.u32 %s1014_s10, 4  ;;  %s23_s9 = int_to_ptr.vmem [resolvable:$true] %s22_s9  ;;  %s46_s11 = int_to_ptr.vmem [resolvable:$true] %s45_s11 }
  0x11   :  { %s930_s12 = scalar_lea.vmem %s23_s9, 256  ;;  %p935_p6 = scmp.lt.s32.totalorder %s23_s9, %s23_s9 }
  0x12   :  { %p931_p5 = scmp.ne.s32.totalorder %s23_s9, %s930_s12  ;;  %p936_p7 = scmp.lt.s32.totalorder %s930_s12, %s930_s12 }
  0x14   :  { %p937_p8 = por %p936_p7, %p935_p6 }
  0x16   :  { %p938_p9 = pnand %p937_p8, %p931_p5 }
  0x18   :  { %941 = shalt.err (!%p938_p9)
}
  0x19   :  { %25 = dma.hbm_to_vmem [thread:$0]  %s1110_s0, 256, %s23_s9, [#allocation3]  }
  0x1a   :  { %s950_s15 = scalar_lea.vmem %s46_s11, 1024  ;;  %p955_p11 = scmp.lt.s32.totalorder %s46_s11, %s46_s11 }
  0x1b   :  { %p951_p10 = scmp.ne.s32.totalorder %s46_s11, %s950_s15  ;;  %p956_p12 = scmp.lt.s32.totalorder %s950_s15, %s950_s15 }
  0x1d   :  { %p957_p13 = por %p956_p12, %p955_p11 }
  0x1f   :  { %p958_p0 = pnand %p957_p13, %p951_p10 }
  0x21   :  { %961 = shalt.err (!%p958_p0)
}
  0x22   :  { %51 = dma.hbm_to_vmem [thread:$0]  %s1113_s3, 1024, %s46_s11, [#allocation6], %s1011_s27, %s1011_s27, %s1012_s28  }
  0x23   :  { %s1015_s17 = smov [#allocation8]  }
  0x24   :  { %s59_s18 = sshll.u32 %s1015_s17, 4  ;;  %s60_s18 = int_to_ptr.vmem [resolvable:$true] %s59_s18 }
  0x25   :  { %s970_s19 = scalar_lea.vmem %s60_s18, 1024  ;;  %p975_p2 = scmp.lt.s32.totalorder %s60_s18, %s60_s18 }
  0x26   :  { %p971_p1 = scmp.ne.s32.totalorder %s60_s18, %s970_s19  ;;  %p976_p3 = scmp.lt.s32.totalorder %s970_s19, %s970_s19 }
  0x28   :  { %p977_p4 = por %p976_p3, %p975_p2 }
  0x2a   :  { %p978_p5 = pnand %p977_p4, %p971_p1 }
  0x2c   :  { %981 = shalt.err (!%p978_p5)
}
  0x2d   :  { %65 = dma.hbm_to_vmem [thread:$0]  %s1115_s5, 1024, %s60_s18, [#allocation9], %s1011_s27, %s1011_s27, %s1012_s28  }
  0x2e   :  { %1002 = dma.done.wait [#allocation3], 256  }
  0x2f   :  { %1003 = vsyncadd [#allocation3], 4294967040 }
  0x30   :  { %1004 = dma.done.wait [#allocation6], 5120  }
  0x31   :  { %1005 = vsyncadd [#allocation6], 4294962176 }
  0x32   :  { %1006 = dma.done.wait [#allocation9], 1024  }
  0x33   :  { %1007 = vsyncadd [#allocation9], 4294966272  ;;  %v850_v0 = vld [vmem:[#allocation5 + $0x78] sm:$0xff]   ;;  %v854_v4 = vld [vmem:[#allocation5 + $0x70] sm:$0xff]   ;;  %v1016_v39 = vmov 0.0   ;;  %vm1017_vm0 = vmmov 0  }
  0x34   :  { %v851_v1 = vld [vmem:[#allocation5 + $0xf8] sm:$0xff]   ;;  %739 = vmatprep.subr.bf16.mxu0 %v850_v0  ;;  %v855_v5 = vld [vmem:[#allocation5 + $0xf0] sm:$0xff]   ;;  %v858_v8 = vld [vmem:[#allocation5 + $0x68] sm:$0xff]   ;;  %s1018_s24 = smov [#allocation10]  }
  0x35   :  { %v852_v2 = vld [vmem:[#allocation5 + $0x38] sm:$0xff]   ;;  %761 = vmatprep.subr.bf16.mxu1 %v851_v1  ;;  %v856_v6 = vld [vmem:[#allocation5 + $0x30] sm:$0xff]   ;;  %v859_v9 = vld [vmem:[#allocation5 + $0xe8] sm:$0xff]   ;;  %s673_s25 = sshll.u32 %s1018_s24, 4  ;;  %s674_s25 = int_to_ptr.vmem [resolvable:$true] %s673_s25 }
  0x36   :  { %v853_v3 = vld [vmem:[#allocation5 + $0xb8] sm:$0xff]   ;;  %740 = vmatpush3.bf16.msra.mxu0 %v852_v2  ;;  %v857_v7 = vld [vmem:[#allocation5 + $0xb0] sm:$0xff]   ;;  %v860_v10 = vld [vmem:[#allocation5 + $0x28] sm:$0xff]   ;;  %p987_p7 = scmp.lt.s32.totalorder %s674_s25, %s674_s25 }
  0x37   :  { %762 = vmatpush3.bf16.msra.mxu1 %v853_v3  ;;  %741 = vmatprep.subr.bf16.mxu0 %v854_v4  ;;  %v861_v11 = vld [vmem:[#allocation5 + $0xa8] sm:$0xff]   ;;  %v862_v12 = vld [vmem:[#allocation5 + $0x60] sm:$0xff]   ;;  %v866_v16 = vld [vmem:[#allocation5 + $0x58] sm:$0xff]  }
  0x38   :  { %763 = vmatprep.subr.bf16.mxu1 %v855_v5  ;;  %v863_v13 = vld [vmem:[#allocation5 + $0xe0] sm:$0xff]   ;;  %v867_v17 = vld [vmem:[#allocation5 + $0xd8] sm:$0xff]   ;;  %v870_v20 = vld [vmem:[#allocation5 + $0x50] sm:$0xff]  }
  0x39   :  { %v864_v14 = vld [vmem:[#allocation5 + $0x20] sm:$0xff]   ;;  %v868_v18 = vld [vmem:[#allocation5 + $0x18] sm:$0xff]   ;;  %v871_v21 = vld [vmem:[#allocation5 + $0xd0] sm:$0xff]  }
  0x3a   :  { %742 = vmatpush3.bf16.msra.mxu0 %v856_v6  ;;  %v865_v15 = vld [vmem:[#allocation5 + $0xa0] sm:$0xff]   ;;  %v869_v19 = vld [vmem:[#allocation5 + $0x98] sm:$0xff]   ;;  %v872_v22 = vld [vmem:[#allocation5 + $0x10] sm:$0xff]  }
  0x3b   :  { %764 = vmatpush3.bf16.msra.mxu1 %v857_v7  ;;  %743 = vmatprep.subr.bf16.mxu0 %v858_v8  ;;  %v873_v23 = vld [vmem:[#allocation5 + $0x90] sm:$0xff]   ;;  %v874_v24 = vld [vmem:[#allocation5 + $0x48] sm:$0xff]   ;;  %v878_v28 = vld [vmem:[#allocation5 + $0x40] sm:$0xff]  }
  0x3c   :  { %765 = vmatprep.subr.bf16.mxu1 %v859_v9  ;;  %v875_v25 = vld [vmem:[#allocation5 + $0xc8] sm:$0xff]   ;;  %v879_v29 = vld [vmem:[#allocation5 + $0xc0] sm:$0xff]   ;;  %v81_v32 = vld [vmem:[#allocation2] sm:$0xff] }
  0x3d   :  { %v876_v26 = vld [vmem:[#allocation5 + $0x8] sm:$0xff]   ;;  %v880_v30 = vld [vmem:[#allocation5] sm:$0xff]   ;;  %v82_v33 = vld [vmem:[#allocation2 + $0x8] sm:$0xff]  ;;  %v685_v34 = vcombine.low %v81_v32, %v81_v32  ;;  %v686_v35 = vcombine.high %v81_v32, %v81_v32 }
  0x3e   :  { %744 = vmatpush3.bf16.msra.mxu0 %v860_v10  ;;  %v877_v27 = vld [vmem:[#allocation5 + $0x88] sm:$0xff]   ;;  %v881_v31 = vld [vmem:[#allocation5 + $0x80] sm:$0xff]   ;;  %v687_v36 = vcombine.low %v82_v33, %v82_v33  ;;  %v688_v37 = vcombine.high %v82_v33, %v82_v33  ;;  %v886_v38 = vld [vmem:[#allocation7 + $0x38] sm:$0xff]  }
  0x3f   :  { %766 = vmatpush3.bf16.msra.mxu1 %v861_v11  ;;  %745 = vmatprep.subr.bf16.mxu0 %v862_v12  ;;  %v887_v40 = vld [vmem:[#allocation7 + $0x30] sm:$0xff]   ;;  %v888_v41 = vld [vmem:[#allocation7 + $0x28] sm:$0xff]   ;;  %v889_v42 = vld [vmem:[#allocation7 + $0x20] sm:$0xff]  }
  0x40   :  { %767 = vmatprep.subr.bf16.mxu1 %v863_v13  ;;  %392 = vmatprep.mubr.bf16.mxu0 %v686_v35  ;;  %v890_v43 = vld [vmem:[#allocation7 + $0x18] sm:$0xff]   ;;  %v891_v44 = vld [vmem:[#allocation7 + $0x10] sm:$0xff]   ;;  %v892_v45 = vld [vmem:[#allocation7 + $0x8] sm:$0xff]  }
  0x41   :  { %432 = vmatprep.mubr.bf16.mxu1 %v688_v37  ;;  %v893_v46 = vld [vmem:[#allocation7] sm:$0xff]   ;;  %v894_v47 = vld [vmem:[#allocation8 + $0x38] sm:$0xff]   ;;  %v895_v48 = vld [vmem:[#allocation8 + $0x30] sm:$0xff]  }
  0x42   :  { %746 = vmatpush3.bf16.msra.mxu0 %v864_v14  ;;  %v896_v49 = vld [vmem:[#allocation8 + $0x28] sm:$0xff]   ;;  %v897_v50 = vld [vmem:[#allocation8 + $0x20] sm:$0xff]   ;;  %v898_v51 = vld [vmem:[#allocation8 + $0x18] sm:$0xff]  }
  0x43   :  { %768 = vmatpush3.bf16.msra.mxu1 %v865_v15  ;;  %747 = vmatprep.subr.bf16.mxu0 %v866_v16  ;;  %v899_v52 = vld [vmem:[#allocation8 + $0x10] sm:$0xff]   ;;  %v900_v4 = vld [vmem:[#allocation8 + $0x8] sm:$0xff]   ;;  %v901_v5 = vld [vmem:[#allocation8] sm:$0xff]  }
  0x44   :  { %769 = vmatprep.subr.bf16.mxu1 %v867_v17  ;;  %v684_v55 = vld [vmem:[%s1112_s2] ss:$0 sm:$0xff] }
  0x45   :  { %v721_v6 = vld [vmem:[%s1114_s4] ss:$0 sm:$0xff]  ;;  %s982_s4 = scalar_lea.vmem %s674_s25, 128 }
  0x46   :  { %748 = vmatpush3.bf16.msra.mxu0 %v868_v18  ;;  %v730_v14 = vld [vmem:[%s1116_s6] ss:$0 sm:$0xff]  ;;  %p983_p6 = scmp.ne.s32.totalorder %s674_s25, %s982_s4  ;;  %p988_p8 = scmp.lt.s32.totalorder %s982_s4, %s982_s4 }
  0x47   :  { %770 = vmatpush3.bf16.msra.mxu1 %v869_v19  ;;  %749 = vmatprep.subr.bf16.mxu0 %v870_v20 }
  0x48   :  { %771 = vmatprep.subr.bf16.mxu1 %v871_v21  ;;  %p989_p9 = por %p988_p8, %p987_p7 }
  0x4a   :  { %750 = vmatpush3.bf16.msra.mxu0 %v872_v22  ;;  %p990_p10 = pnand %p989_p9, %p983_p6 }
  0x4b   :  { %772 = vmatpush3.bf16.msra.mxu1 %v873_v23  ;;  %751 = vmatprep.subr.bf16.mxu0 %v874_v24 }
  0x4c   :  { %773 = vmatprep.subr.bf16.mxu1 %v875_v25 }
  0x4e   :  { %752 = vmatpush3.bf16.msra.mxu0 %v876_v26 }
  0x4f   :  { %774 = vmatpush3.bf16.msra.mxu1 %v877_v27  ;;  %753 = vmatprep.subr.bf16.mxu0 %v878_v28 }
  0x50   :  { %775 = vmatprep.subr.bf16.mxu1 %v879_v29 }
  0x52   :  { %754 = vmatpush3.bf16.msra.mxu0 %v880_v30 }
  0x53   :  { %776 = vmatpush3.bf16.msra.mxu1 %v881_v31  ;;  %801 = vmatprep.subr.bf16.mxu0 %v1016_v39 }
  0x54   :  { %821 = vmatprep.subr.bf16.mxu1 %v1016_v39 }
  0x55   :  { %393 = vmatmul.mubr.bf16.vlgmr.msra.gmra.mxu0 %v685_v34 }
  0x56   :  { %433 = vmatmul.mubr.bf16.vlgmr.msra.gmra.mxu1 %v687_v36  ;;  %802 = vmatpush3.bf16.msra.mxu0 %v886_v38 }
  0x57   :  { %803 = vmatprep.subr.bf16.mxu0 %v1016_v39  ;;  %817 = vmatprep.mubr.msk.bf16.mxu0 %vm1017_vm0, %v1016_v39 }
  0x58   :  { %837 = vmatprep.mubr.msk.bf16.mxu1 %vm1017_vm0, %v1016_v39  ;;  %822 = vmatpush3.bf16.msra.mxu1 %v894_v47 }
  0x59   :  { %823 = vmatprep.subr.bf16.mxu1 %v1016_v39 }
  0x5a   :  { %804 = vmatpush3.bf16.msra.mxu0 %v887_v40 }
  0x5b   :  { %805 = vmatprep.subr.bf16.mxu0 %v1016_v39 }
  0x5c   :  { %824 = vmatpush3.bf16.msra.mxu1 %v895_v48 }
  0x5d   :  { %825 = vmatprep.subr.bf16.mxu1 %v1016_v39 }
  0x5e   :  { %806 = vmatpush3.bf16.msra.mxu0 %v888_v41 }
  0x5f   :  { %807 = vmatprep.subr.bf16.mxu0 %v1016_v39 }
  0x60   :  { %826 = vmatpush3.bf16.msra.mxu1 %v896_v49 }
  0x61   :  { %827 = vmatprep.subr.bf16.mxu1 %v1016_v39 }
  0x62   :  { %808 = vmatpush3.bf16.msra.mxu0 %v889_v42 }
  0x63   :  { %809 = vmatprep.subr.bf16.mxu0 %v1016_v39 }
  0x64   :  { %828 = vmatpush3.bf16.msra.mxu1 %v897_v50 }
  0x65   :  { %829 = vmatprep.subr.bf16.mxu1 %v1016_v39 }
  0x66   :  { %810 = vmatpush3.bf16.msra.mxu0 %v890_v43 }
  0x67   :  { %811 = vmatprep.subr.bf16.mxu0 %v1016_v39 }
  0x68   :  { %830 = vmatpush3.bf16.msra.mxu1 %v898_v51 }
  0x69   :  { %831 = vmatprep.subr.bf16.mxu1 %v1016_v39 }
  0x6a   :  { %812 = vmatpush3.bf16.msra.mxu0 %v891_v44 }
  0x6b   :  { %813 = vmatprep.subr.bf16.mxu0 %v1016_v39 }
  0x6c   :  { %832 = vmatpush3.bf16.msra.mxu1 %v899_v52 }
  0x6d   :  { %833 = vmatprep.subr.bf16.mxu1 %v1016_v39 }
  0x6e   :  { %814 = vmatpush3.bf16.msra.mxu0 %v892_v45 }
  0x6f   :  { %815 = vmatprep.subr.bf16.mxu0 %v1016_v39 }
  0x70   :  { %834 = vmatpush3.bf16.msra.mxu1 %v900_v4 }
  0x71   :  { %835 = vmatprep.subr.bf16.mxu1 %v1016_v39 }
  0x72   :  { %816 = vmatpush3.bf16.msra.mxu0 %v893_v46 }
  0x74   :  { %836 = vmatpush3.bf16.msra.mxu1 %v901_v5 }
 0x115   :  { %v755_v53 = vpop.f32.mrf.mxu0 }
 0x116   :  { %v777_v54 = vpop.f32.mrf.mxu1 }
 0x117   :  { %v756_v56 = vpop.f32.mrf.mxu0 }
 0x118   :  { %v778_v57 = vpop.f32.mrf.mxu1  ;;  %v757_v58 = vadd.f32 %v756_v56, %v755_v53 }
 0x119   :  { %v758_v59 = vpop.f32.mrf.mxu0  ;;  %v779_v62 = vadd.f32 %v778_v57, %v777_v54 }
 0x11a   :  { %v780_v60 = vpop.f32.mrf.mxu1  ;;  %v395_v61 = vadd.f32 %v757_v58, %v684_v55 }
 0x11b   :  { %v759_v63 = vpop.f32.mrf.mxu0 }
 0x11c   :  { %v781_v0 = vpop.f32.mrf.mxu1  ;;  %v435_v1 = vadd.f32 %v779_v62, %v395_v61 }
 0x11e   :  { %v440_v2 = vmax.f32 %v435_v1, 0.0 }
 0x120   :  { %v441_v3 = vpack.c.bf16 %v440_v2, %v440_v2 }
 0x122   :  { %818 = vmatmul.mubr.bf16.vlgmr.msra.gmra.mxu0 %v441_v3 }
 0x1e2   :  { %v547_v7 = vpop.f32.mrf.mxu0 }
 0x1e3   :  { %v548_v8 = vadd.f32 %v721_v6, %v547_v7 }
 0x1e4   :  { %v819_v9 = vpop.f32.mrf.mxu0 }
 0x1e5   :  { %v553_v10 = vmax.f32 %v548_v8, 0.0 }
 0x1e6   :  { %v550_v11 = vpop.f32.mrf.mxu0 }
 0x1e7   :  { %v554_v12 = vpack.c.bf16 %v553_v10, %v553_v10 }
 0x1e8   :  { %v820_v13 = vpop.f32.mrf.mxu0 }
 0x1e9   :  { %838 = vmatmul.mubr.bf16.vlgmr.msra.gmra.mxu1 %v554_v12 }
 0x2a9   :  { %v660_v15 = vpop.f32.mrf.mxu1 }
 0x2aa   :  { %v661_v16 = vadd.f32 %v730_v14, %v660_v15 }
 0x2ab   :  { %v839_v17 = vpop.f32.mrf.mxu1 }
 0x2ac   :  { %666 = vst [vmem:[#allocation10] sm:$0xff] %v661_v16 }
 0x2ad   :  { %v663_v18 = vpop.f32.mrf.mxu1 }
 0x2ae   :  { %993 = shalt.err (!%p990_p10)
}
 0x2af   :  { %676 = dma.vmem_to_hbm [thread:$0]  %s674_s25, 128, %s1117_s7, [#allocation4]   ;;  %v840_v19 = vpop.f32.mrf.mxu1 }
 0x2b0   :  { %1008 = dma.done.wait [#allocation4], 128  }
 0x2b1   :  { %1009 = vsyncadd [#allocation4], 4294967168 }
 0x2b2   :  { %680 = vsyncpa [#allocation3], 1 }
 0x2b3   :  { %681 = vsyncpa [#allocation6], 1 }
 0x2b4   :  { %682 = vsyncpa [#allocation9], 1 }
 0x2b5   :  { %683 = vsyncpa [#allocation4], 1 }

</bundles_post_ra>
